<compile_context>
chip_gen: v5e
topology: v5e:2x2
jax: 0.10.0
libtpu: 0.0.40
codegen_flags: <defaults>
</compile_context>

<pallas_src>
import functools

import jax
import jax.numpy as jnp
from jax.experimental import pallas as pl
from jax.experimental.pallas import tpu as pltpu

_MIB = 1024 * 1024
_WHOLE_SLAB_VMEM_BUDGET = 40 * _MIB     # conservative across v5e/v6e/v7x
_TILE_VMEM_BUDGET = 8 * _MIB            # double-buffered x tile budget (fallback)


def _vmem_limit(bytes_needed):
    """Explicit scoped-VMEM request: at least 32 MiB, at most 48 MiB
    (leaves headroom on v7x's 64 MiB physical VMEM)."""
    return int(min(max(bytes_needed, 32 * _MIB), 48 * _MIB))


# --------------------------------------------------------------------------
# Whole-slab fused kernel: one batch element per grid step, x read from HBM once.
# --------------------------------------------------------------------------
def _netlin_fused_kernel(x_ref, w1t_ref, b1_ref, w2t_ref, b2_ref, wc_ref,
                         o_ref, *, inv_hw):
    # x_ref: (C, HWp) in the activation dtype (bf16 or f32).
    # --- SE squeeze: spatial mean (VPU lane reduction, f32 accumulation) ----
    ssum = jnp.sum(x_ref[...], axis=-1, keepdims=True, dtype=jnp.float32)   # (C, 1)
    avg = ssum * inv_hw                                                     # (C, 1)
    # --- fc1 + ReLU (tiny, VPU, f32) ----------------------------------------
    h = jnp.sum(avg * w1t_ref[...], axis=0, keepdims=True) + b1_ref[...]    # (1, Hd)
    h = jnp.maximum(h, 0.0)
    # --- fc2 + sigmoid, row oriented so the gate becomes a (1, C) lane row --
    z = jnp.dot(h, w2t_ref[...], preferred_element_type=jnp.float32)        # (1, C)
    z = z + b2_ref[...]
    y = 1.0 / (1.0 + jnp.exp(-z))                                           # sigmoid
    # --- SE excite + 1x1 conv fused: a single MXU matmul over the slab ------
    w_eff = (y * wc_ref[...]).astype(x_ref.dtype)                           # (1, C)
    out = jnp.dot(w_eff, x_ref[...], preferred_element_type=jnp.float32)    # (1, HWp)
    o_ref[...] = out.astype(o_ref.dtype)


def _forward_whole_slab(x_flat, w1, b1, w2, b2, wconv, *, hw_true, vmem_bytes):
    B, C, HWp = x_flat.shape
    Hd = w1.shape[0]
    w1t = w1.T.astype(jnp.float32)               # (C, Hd)
    b1r = b1.reshape(1, Hd).astype(jnp.float32)  # (1, Hd)
    w2t = w2.T.astype(jnp.float32)               # (Hd, C)
    b2r = b2.reshape(1, C).astype(jnp.float32)   # (1, C)
    wcr = wconv.reshape(1, C).astype(jnp.float32)

    kernel = functools.partial(_netlin_fused_kernel, inv_hw=1.0 / float(hw_true))
    return pl.pallas_call(
        kernel,
        out_shape=jax.ShapeDtypeStruct((B, 1, HWp), x_flat.dtype),
        grid_spec=pltpu.PrefetchScalarGridSpec(
            num_scalar_prefetch=0,
            grid=(B,),   # NOTE: on v7x megacore both TCs are used only for B >= 2
            in_specs=[
                pl.BlockSpec((None, C, HWp), lambda b: (b, 0, 0)),   # x slab
                pl.BlockSpec((C, Hd), lambda b: (0, 0)),             # W1^T
                pl.BlockSpec((1, Hd), lambda b: (0, 0)),             # b1
                pl.BlockSpec((Hd, C), lambda b: (0, 0)),             # W2^T
                pl.BlockSpec((1, C), lambda b: (0, 0)),              # b2
                pl.BlockSpec((1, C), lambda b: (0, 0)),              # conv weight
            ],
            # full (1, HWp) trailing dims, HWp a multiple of 128 -> unmasked stores
            out_specs=pl.BlockSpec((None, 1, HWp), lambda b: (b, 0, 0)),
        ),
        compiler_params=pltpu.CompilerParams(
            dimension_semantics=("parallel",),
            vmem_limit_bytes=_vmem_limit(vmem_bytes),
        ),
    )(x_flat, w1t, b1r, w2t, b2r, wcr)


# --------------------------------------------------------------------------
# Two-pass HW-tiled fallback (large C*HW): reads x twice, never holds the slab.
# --------------------------------------------------------------------------
def _chan_sum_kernel(x_ref, s_ref):
    # Accumulate per-channel spatial sums across HW tiles into the resident
    # (C, 1) f32 output block.
    @pl.when(pl.program_id(1) == 0)
    def _():
        s_ref[...] = jnp.zeros_like(s_ref)
    s_ref[...] += jnp.sum(x_ref[...], axis=-1, keepdims=True, dtype=jnp.float32)


def _gated_conv_kernel(w_ref, x_ref, o_ref):
    # (1, C) @ (C, tile) on the MXU: fused SE-excite + 1x1 conv for one tile.
    o_ref[...] = jnp.dot(w_ref[...], x_ref[...],
                         preferred_element_type=jnp.float32).astype(o_ref.dtype)


def _forward_tiled(x_flat, w1, b1, w2, b2, wconv, *, hw_true):
    B, C, HWp = x_flat.shape
    dt = x_flat.dtype
    itemsize = dt.itemsize

    # Largest HW tile (multiple of 128 dividing HWp) whose double-buffered x
    # block fits the tile budget.
    tile = 128
    for cand in range(HWp, 127, -128):
        if HWp % cand == 0 and 2 * C * cand * itemsize <= _TILE_VMEM_BUDGET:
            tile = cand
            break
    n_tiles = HWp // tile

    # Pass 1: per-batch per-channel spatial sums (f32 accumulation).
    sums = pl.pallas_call(
        _chan_sum_kernel,
        out_shape=jax.ShapeDtypeStruct((B, C, 1), jnp.float32),
        grid_spec=pltpu.PrefetchScalarGridSpec(
            num_scalar_prefetch=0,
            grid=(B, n_tiles),
            in_specs=[pl.BlockSpec((None, C, tile), lambda b, t: (b, 0, t))],
            out_specs=pl.BlockSpec((None, C, 1), lambda b, t: (b, 0, 0)),
        ),
        compiler_params=pltpu.CompilerParams(
            dimension_semantics=("parallel", "arbitrary"),
            vmem_limit_bytes=_vmem_limit(4 * C * tile * itemsize),
        ),
    )(x_flat)

    # Gate math on (B, C) scalars: tiny, stays in plain JAX / f32.
    avg = sums[:, :, 0] * (1.0 / float(hw_true))
    h = jnp.maximum(avg @ w1.T.astype(jnp.float32) + b1.astype(jnp.float32), 0.0)
    y = jax.nn.sigmoid(h @ w2.T.astype(jnp.float32) + b2.astype(jnp.float32))
    w_eff = (y * wconv.astype(jnp.float32)[None, :]).astype(dt).reshape(B, 1, C)

    # Pass 2: gated 1x1 conv, one MXU matmul per lane-dense HW tile.
    return pl.pallas_call(
        _gated_conv_kernel,
        out_shape=jax.ShapeDtypeStruct((B, 1, HWp), dt),
        grid_spec=pltpu.PrefetchScalarGridSpec(
            num_scalar_prefetch=0,
            grid=(B, n_tiles),
            in_specs=[
                pl.BlockSpec((None, 1, C), lambda b, t: (b, 0, 0)),      # gated conv row
                pl.BlockSpec((None, C, tile), lambda b, t: (b, 0, t)),   # x tile
            ],
            out_specs=pl.BlockSpec((None, 1, tile), lambda b, t: (b, 0, t)),
        ),
        compiler_params=pltpu.CompilerParams(
            dimension_semantics=("parallel", "arbitrary"),
            vmem_limit_bytes=_vmem_limit(4 * C * tile * itemsize),
        ),
    )(w_eff, x_flat)


# --------------------------------------------------------------------------
# Public wrapper
# --------------------------------------------------------------------------
def netlin_forward(x, w1, b1, w2, b2, wconv, *, force_tiled=False):
    """NetLinLayer forward.  x: (B, C, H, W) in bf16 or f32 (kept in its native
    dtype -- no HBM upcast).  Returns (B, 1, H, W) in x's dtype."""
    B, C, H, W = x.shape
    HW = H * W
    wconv = wconv.reshape(C)   # accept (1, C, 1, 1) conv weight as well

    # Lane-dense spatial axis: pad HW to a multiple of 128 (zeros add nothing to
    # the spatial sum; the padded output columns are sliced off below).
    HWp = ((HW + 127) // 128) * 128
    x_flat = x.reshape(B, C, HW)
    if HWp != HW:
        x_flat = jnp.pad(x_flat, ((0, 0), (0, 0), (0, HWp - HW)))

    itemsize = x_flat.dtype.itemsize
    x_block = C * HWp * itemsize
    f32_tmp = 0 if x_flat.dtype == jnp.float32 else C * HWp * 4  # sum upcast temp
    whole_slab_bytes = 2 * x_block + f32_tmp + 2 * HWp * itemsize + 2 * _MIB

    if force_tiled or whole_slab_bytes > _WHOLE_SLAB_VMEM_BUDGET:
        out_flat = _forward_tiled(x_flat, w1, b1, w2, b2, wconv, hw_true=HW)
    else:
        out_flat = _forward_whole_slab(x_flat, w1, b1, w2, b2, wconv,
                                       hw_true=HW, vmem_bytes=whole_slab_bytes)
    return out_flat[:, :, :HW].reshape(B, 1, H, W)


def netlin_ref(x, w1, b1, w2, b2, wconv):
    """Pure-JAX f32 reference matching the PyTorch forward."""
    x = x.astype(jnp.float32)
    avg = jnp.mean(x, axis=(2, 3))                          # (B, C)
    h = jnp.maximum(avg @ w1.T + b1, 0.0)                   # (B, Hd)
    y = jax.nn.sigmoid(h @ w2.T + b2)                       # (B, C)
    xs = x * y[:, :, None, None]                            # SE excite
    out = jnp.sum(xs * wconv.reshape(1, -1, 1, 1), axis=1, keepdims=True)
    return out                                              # (B, 1, H, W)


if __name__ == "__main__":
    # Small shapes consistent with the module: chn_in must be a multiple of 32
    # so reduction = int(chn_in / 32) >= 1.  C=64 -> reduction=2, hidden=32.
    B, C, H, W = 2, 64, 16, 16
    reduction = int(C / 32)
    Hd = C // reduction

    key = jax.random.PRNGKey(0)
    kx, k1, kb1, k2, kb2, kc = jax.random.split(key, 6)
    x_f32 = jax.random.normal(kx, (B, C, H, W), dtype=jnp.float32)
    w1 = jax.random.normal(k1, (Hd, C), dtype=jnp.float32) * 0.1     # SELayer.fc[0]
    b1 = jax.random.normal(kb1, (Hd,), dtype=jnp.float32) * 0.1
    w2 = jax.random.normal(k2, (C, Hd), dtype=jnp.float32) * 0.1     # SELayer.fc[2]
    b2 = jax.random.normal(kb2, (C,), dtype=jnp.float32) * 0.1
    wconv = jax.random.normal(kc, (C,), dtype=jnp.float32) * 0.1     # Conv2d(C,1,1), no bias

    # MXU matmuls may use bf16 multiplies with f32 accumulation under default
    # precision, and bf16 paths quantize the output; 2e-2 comfortably covers
    # that while still catching any real (layout / transpose / math) bug.
    TOL = 2e-2

    # (1) Recommended path: bf16 activations, fused whole-slab kernel.
    x_bf16 = x_f32.astype(jnp.bfloat16)
    ref_bf16 = netlin_ref(x_bf16, w1, b1, w2, b2, wconv)
    out_bf16 = jax.block_until_ready(netlin_forward(x_bf16, w1, b1, w2, b2, wconv))
    assert out_bf16.shape == (B, 1, H, W), out_bf16.shape
    assert out_bf16.dtype == jnp.bfloat16, out_bf16.dtype
    err = float(jnp.max(jnp.abs(out_bf16.astype(jnp.float32) - ref_bf16)))
    assert err < TOL, f"bf16 whole-slab path error {err}"

    # (2) f32 activations, fused whole-slab kernel.
    ref_f32 = netlin_ref(x_f32, w1, b1, w2, b2, wconv)
    out_f32 = jax.block_until_ready(netlin_forward(x_f32, w1, b1, w2, b2, wconv))
    assert out_f32.shape == (B, 1, H, W), out_f32.shape
    err = float(jnp.max(jnp.abs(out_f32 - ref_f32)))
    assert err < TOL, f"f32 whole-slab path error {err}"

    # (3) Two-pass HW-tiled fallback, exercised explicitly at small shapes.
    out_tiled = jax.block_until_ready(
        netlin_forward(x_bf16, w1, b1, w2, b2, wconv, force_tiled=True))
    err = float(jnp.max(jnp.abs(out_tiled.astype(jnp.float32) - ref_bf16)))
    assert err < TOL, f"tiled fallback path error {err}"

    print("KERNEL_OK")
</pallas_src>

<mosaic_0001>
module attributes {stable_mosaic.version = 11 : i64} {
  func.func @_netlin_fused_kernel(%arg0: i32, %arg1: memref<1x64x256xbf16, #tpu.memory_space<vmem>>, %arg2: memref<64x32xf32, #tpu.memory_space<vmem>>, %arg3: memref<1x32xf32, #tpu.memory_space<vmem>>, %arg4: memref<32x64xf32, #tpu.memory_space<vmem>>, %arg5: memref<1x64xf32, #tpu.memory_space<vmem>>, %arg6: memref<1x64xf32, #tpu.memory_space<vmem>>, %arg7: memref<1x1x256xbf16, #tpu.memory_space<vmem>>) attributes {dimension_semantics = [#tpu.dimension_semantics<parallel>], iteration_bounds = array<i64: 2>, scalar_prefetch = 0 : i64, scratch_operands = 0 : i64, tpu.core_type = #tpu.core_type<tc>, window_params = [{transform_indices = @transform_0, window_bounds = array<i64: 1, 64, 256>}, {pipeline_mode = #tpu.pipeline_mode<synchronous>, transform_indices = @transform_1, window_bounds = array<i64: 64, 32>}, {pipeline_mode = #tpu.pipeline_mode<synchronous>, transform_indices = @transform_2, window_bounds = array<i64: 1, 32>}, {pipeline_mode = #tpu.pipeline_mode<synchronous>, transform_indices = @transform_3, window_bounds = array<i64: 32, 64>}, {pipeline_mode = #tpu.pipeline_mode<synchronous>, transform_indices = @transform_4, window_bounds = array<i64: 1, 64>}, {pipeline_mode = #tpu.pipeline_mode<synchronous>, transform_indices = @transform_5, window_bounds = array<i64: 1, 64>}, {transform_indices = @transform_6, window_bounds = array<i64: 1, 1, 256>}]} {
    %c0 = arith.constant 0 : index
    %c0_0 = arith.constant 0 : index
    %c0_1 = arith.constant 0 : index
    %0 = vector.load %arg1[%c0, %c0_0, %c0_1] : memref<1x64x256xbf16, #tpu.memory_space<vmem>>, vector<1x64x256xbf16>
    %1 = vector.shape_cast %0 : vector<1x64x256xbf16> to vector<64x256xbf16>
    %2 = arith.extf %1 : vector<64x256xbf16> to vector<64x256xf32>
    %cst = arith.constant dense<0.000000e+00> : vector<64xf32>
    %3 = vector.multi_reduction <add>, %2, %cst [1] : vector<64x256xf32> to vector<64xf32>
    %4 = vector.shape_cast %3 : vector<64xf32> to vector<64x1xf32>
    %cst_2 = arith.constant 3.906250e-03 : f32
    %5 = vector.broadcast %cst_2 : f32 to vector<64x1xf32>
    %6 = arith.mulf %4, %5 : vector<64x1xf32>
    %c0_3 = arith.constant 0 : index
    %c0_4 = arith.constant 0 : index
    %7 = vector.load %arg2[%c0_3, %c0_4] : memref<64x32xf32, #tpu.memory_space<vmem>>, vector<64x32xf32>
    %8 = vector.broadcast %6 : vector<64x1xf32> to vector<64x32xf32>
    %9 = arith.mulf %8, %7 : vector<64x32xf32>
    %cst_5 = arith.constant dense<0.000000e+00> : vector<32xf32>
    %10 = vector.multi_reduction <add>, %9, %cst_5 [0] : vector<64x32xf32> to vector<32xf32>
    %11 = vector.shape_cast %10 : vector<32xf32> to vector<1x32xf32>
    %c0_6 = arith.constant 0 : index
    %c0_7 = arith.constant 0 : index
    %12 = vector.load %arg3[%c0_6, %c0_7] : memref<1x32xf32, #tpu.memory_space<vmem>>, vector<1x32xf32>
    %13 = arith.addf %11, %12 : vector<1x32xf32>
    %cst_8 = arith.constant 0.000000e+00 : f32
    %14 = vector.broadcast %cst_8 : f32 to vector<1x32xf32>
    %15 = arith.maximumf %13, %14 : vector<1x32xf32>
    %c0_9 = arith.constant 0 : index
    %c0_10 = arith.constant 0 : index
    %16 = vector.load %arg4[%c0_9, %c0_10] : memref<32x64xf32, #tpu.memory_space<vmem>>, vector<32x64xf32>
    %cst_11 = arith.constant dense<0.000000e+00> : vector<1x64xf32>
    %17 = tpu.matmul %15, %16, %cst_11 {dimension_numbers = #tpu.dot_dimension_numbers<[1], [0], [0], [1], [0, 0, 1, 1], [], []>} : vector<1x32xf32>, vector<32x64xf32>, vector<1x64xf32> -> vector<1x64xf32>
    %c0_12 = arith.constant 0 : index
    %c0_13 = arith.constant 0 : index
    %18 = vector.load %arg5[%c0_12, %c0_13] : memref<1x64xf32, #tpu.memory_space<vmem>>, vector<1x64xf32>
    %19 = arith.addf %17, %18 : vector<1x64xf32>
    %cst_14 = arith.constant 0.000000e+00 : f32
    %20 = vector.broadcast %cst_14 : f32 to vector<1x64xf32>
    %21 = arith.subf %20, %19 : vector<1x64xf32>
    %22 = math.exp %21 : vector<1x64xf32>
    %cst_15 = arith.constant 1.000000e+00 : f32
    %23 = vector.broadcast %cst_15 : f32 to vector<1x64xf32>
    %24 = arith.addf %23, %22 : vector<1x64xf32>
    %cst_16 = arith.constant 1.000000e+00 : f32
    %25 = vector.broadcast %cst_16 : f32 to vector<1x64xf32>
    %26 = arith.divf %25, %24 : vector<1x64xf32>
    %c0_17 = arith.constant 0 : index
    %c0_18 = arith.constant 0 : index
    %27 = vector.load %arg6[%c0_17, %c0_18] : memref<1x64xf32, #tpu.memory_space<vmem>>, vector<1x64xf32>
    %28 = arith.mulf %26, %27 : vector<1x64xf32>
    %29 = arith.truncf %28 : vector<1x64xf32> to vector<1x64xbf16>
    %c0_19 = arith.constant 0 : index
    %c0_20 = arith.constant 0 : index
    %c0_21 = arith.constant 0 : index
    %30 = vector.load %arg1[%c0_19, %c0_20, %c0_21] : memref<1x64x256xbf16, #tpu.memory_space<vmem>>, vector<1x64x256xbf16>
    %31 = vector.shape_cast %30 : vector<1x64x256xbf16> to vector<64x256xbf16>
    %cst_22 = arith.constant dense<0.000000e+00> : vector<1x256xf32>
    %32 = tpu.matmul %29, %31, %cst_22 {dimension_numbers = #tpu.dot_dimension_numbers<[1], [0], [0], [1], [0, 0, 1, 1], [], []>} : vector<1x64xbf16>, vector<64x256xbf16>, vector<1x256xf32> -> vector<1x256xf32>
    %33 = arith.truncf %32 : vector<1x256xf32> to vector<1x256xbf16>
    %c0_23 = arith.constant 0 : index
    %c0_24 = arith.constant 0 : index
    %c0_25 = arith.constant 0 : index
    %34 = vector.load %arg7[%c0_23, %c0_24, %c0_25] : memref<1x1x256xbf16, #tpu.memory_space<vmem>>, vector<1x1x256xbf16>
    %35 = vector.shape_cast %34 : vector<1x1x256xbf16> to vector<1x256xbf16>
    %36 = vector.shape_cast %33 : vector<1x256xbf16> to vector<1x1x256xbf16>
    tpu.vector_store %arg7[%c0_23, %c0_24, %c0_25], %36 {strides = array<i32>} : memref<1x1x256xbf16, #tpu.memory_space<vmem>>, vector<1x1x256xbf16>,
    return
  }
  func.func @transform_0(%arg0: i32) -> (i32, i32, i32) {
    %c0_i32 = arith.constant 0 : i32
    %c0_i32_0 = arith.constant 0 : i32
    %c0_i32_1 = arith.constant 0 : i32
    return %arg0, %c0_i32, %c0_i32_0 : i32, i32, i32
  }
  func.func @transform_1(%arg0: i32) -> (i32, i32) {
    %c0_i32 = arith.constant 0 : i32
    %c0_i32_0 = arith.constant 0 : i32
    %c0_i32_1 = arith.constant 0 : i32
    return %c0_i32, %c0_i32_0 : i32, i32
  }
  func.func @transform_2(%arg0: i32) -> (i32, i32) {
    %c0_i32 = arith.constant 0 : i32
    %c0_i32_0 = arith.constant 0 : i32
    %c0_i32_1 = arith.constant 0 : i32
    return %c0_i32, %c0_i32_0 : i32, i32
  }
  func.func @transform_3(%arg0: i32) -> (i32, i32) {
    %c0_i32 = arith.constant 0 : i32
    %c0_i32_0 = arith.constant 0 : i32
    %c0_i32_1 = arith.constant 0 : i32
    return %c0_i32, %c0_i32_0 : i32, i32
  }
  func.func @transform_4(%arg0: i32) -> (i32, i32) {
    %c0_i32 = arith.constant 0 : i32
    %c0_i32_0 = arith.constant 0 : i32
    %c0_i32_1 = arith.constant 0 : i32
    return %c0_i32, %c0_i32_0 : i32, i32
  }
  func.func @transform_5(%arg0: i32) -> (i32, i32) {
    %c0_i32 = arith.constant 0 : i32
    %c0_i32_0 = arith.constant 0 : i32
    %c0_i32_1 = arith.constant 0 : i32
    return %c0_i32, %c0_i32_0 : i32, i32
  }
  func.func @transform_6(%arg0: i32) -> (i32, i32, i32) {
    %c0_i32 = arith.constant 0 : i32
    %c0_i32_0 = arith.constant 0 : i32
    %c0_i32_1 = arith.constant 0 : i32
    return %arg0, %c0_i32, %c0_i32_0 : i32, i32, i32
  }
}

</mosaic_0001>

<bundles_post_ra>
// kernel: tpu_custom_call.1
= control target key start
LH: loop header
LB: loop body
LE: loop exit
PB: predicated region body
PF: predicated region fallthrough
CT: control target
= control target key end

     0   :  { %11 = vsyncpa [#allocation3], 0  ;;  %s948_s0 = inlined_call_operand.hbm [shape: bf16[2,64,256], index: 0, kind: input, shape index: {}]   ;;  %s949_s1 = inlined_call_operand.vmem [shape: f32[64,32], index: 1, kind: input, shape index: {}]   ;;  %s950_s2 = inlined_call_operand.vmem [shape: f32[1,32], index: 2, kind: input, shape index: {}]   ;;  %s951_s3 = inlined_call_operand.vmem [shape: f32[32,64], index: 3, kind: input, shape index: {}]   ;;  %s952_s4 = inlined_call_operand.vmem [shape: f32[1,64], index: 4, kind: input, shape index: {}]   ;;  %s953_s5 = inlined_call_operand.vmem [shape: f32[1,64], index: 5, kind: input, shape index: {}]   ;;  %s954_s6 = inlined_call_operand.vmem [shape: bf16[2,1,256], index: 6, kind: output, shape index: {}]  }
   0x1   :  { %13 = vsyncpa [#allocation3 + $0x1], 0  ;;  %s776_s21 = smov 0   ;;  %s778_s22 = smov 0  }
   0x2   :  { %s780_s23 = smov 0   ;;  %s782_s24 = smov 0  }
   0x3 LB: > { %s795_s25 = sadd.s32 4294967295, %s737_s24   ;;  %s798_s26 = sadd.s32 1, %s737_s24   ;;  %s737_s24 = sphi %s782_s24, %s961_s24   ;;  %s733_s23 = sphi %s780_s23, %s960_s23   ;;  %s729_s22 = sphi %s778_s22, %s959_s22   ;;  %s725_s21 = sphi %s776_s21, %s958_s21  }
   0x4   : > { %s23_s27 = ssub.s32 %s737_s24, %s798_s26  ;;  %s26_s28 = sadd.s32 1, %s733_s23 }
   0x5   : > { %p24_p0 = scmp.eq.s32.totalorder %s23_s27, 0  ;;  %p33_p1 = scmp.ne.s32.totalorder %s733_s23, %s729_s22 }
   0x6   : > { %p34_p2 = scmp.eq.s32.totalorder %s737_s24, 0  ;;  %p39_p3 = scmp.ne.s32.totalorder %s729_s22, %s725_s21 }
   0x7   : > { %s808_s29 = scalar_select %p24_p0, %s733_s23, %s26_s28  }
   0x8   : > { %p810_p4 = por %p34_p2, %p33_p1  ;;  %p40_p5 = scmp.eq.s32.totalorder %s795_s25, 0 }
   0x9   : > { %p634_p6 = scmp.lt.s32.totalorder %s737_s24, 2  ;;  %s209_s8 = sand.u32 1, %s733_s23  }
   0xa   : > { %p816_p7 = por %p40_p5, %p39_p3  ;;  %s576_s9 = sshll.u32 %s209_s8, 6 }
   0xb   : > { %s619_s10 = sshll.u32 %s737_s24, 6  ;;  %s213_s14 = scalar_lea.vmem [#allocation2], %s576_s9 }
   0xc   : > { %s218_s13 = scalar_lea.hbm %s948_s0, %s619_s10  ;;  %s221_s15 = sshll.u32 %s213_s14, 4  ;;  %s222_s15 = int_to_ptr.vmem [resolvable:$true] %s221_s15 }
   0xd   : > { %s219_s16 = sshll.u32 %s218_s13, 4  ;;  %p827_p8 = pnand %p634_p6, %p810_p4  ;;  %s220_s16 = int_to_ptr.hbm [resolvable:$true] %s219_s16 }
   0xe   : > { %p579_p9 = scmp.ge.s32.totalorder %s737_s24, 1  ;;  %s210_s18 = scalar_lea.sflag [#allocation3], %s209_s8 }
   0xf   : > { %s673_s19 = sshra.s32 %s220_s16, 4  ;;  %p677_p11 = pneg %p827_p8  ;;  %s674_s19 = int_to_ptr.hbm [resolvable:$true] %s673_s19 }
  0x10   : > { %s675_s20 = scalar_lea.hbm %s674_s19, 64  ;;  %s680_s28 = scalar_lea.hbm %s948_s0, 128 }
  0x11   : > { %p676_p10 = scmp.ne.s32.totalorder %s674_s19, %s675_s20  ;;  %p681_p0 = scmp.lt.s32.totalorder %s674_s19, %s948_s0 }
  0x12   : > { %p682_p1 = scmp.lt.s32.totalorder %s680_s28, %s675_s20 }
  0x13   : > { %p678_p12 = pnand %p677_p11, %p676_p10 }
  0x14   : > { %p683_p2 = por %p682_p1, %p681_p0 }
  0x15   : > { %p679_p13 = pneg %p678_p12 }
  0x17   : > { %p684_p3 = pnand %p683_p2, %p679_p13 }
  0x19   : > { %687 = shalt.err (!%p684_p3)
}
  0x1a   : > { %s739_s8 = smov 128   ;;  %s740_s10 = smov 8  }
  0x1b   : > { %633 = dma.hbm_to_vmem [thread:$0]  (!%p827_p8), %s220_s16, 1024, %s222_s15, %s210_s18, %s739_s8, %s739_s8, %s740_s10  }
  0x1c   : > { %p229_p4 = scmp.lt.s32.totalorder %s737_s24, 3 }
  0x1e   : > { %p230_p5 = pnand %p579_p9, %p229_p4 }
  0x1f   : > { %s235_s11 = sand.u32 (!%p230_p5), 1, %s729_s22  }
  0x20   : > { %233 = sbr.rel (%p230_p5) target bundleno = 504 (0x1f8), region = 44  ;;  %s580_s12 = sshll.u32 (!%p230_p5), %s235_s11, 6 }
  0x21   : > { %s236_s13 = scalar_lea.sflag (!%p230_p5), [#allocation3], %s235_s11  ;;  %s846_s14 = scalar_lea.vmem (!%p230_p5), [#allocation2], %s580_s12 }
  0x25   : > { %720 = dma.done.wait (%p816_p7), %s236_s13, 1024  }
  0x26   : > { %722 = vsyncadd (%p816_p7), %s236_s13, 4294966272  ;;  %v273_v0 = vld [vmem:[%s846_s14] sm:$0xff]  ;;  %v275_v1 = vld [vmem:[%s846_s14 + $0x10] sm:$0xff]  ;;  %vm345_vm0 = vcmask 261120   ;;  %vm460_vm5 = vcmask 523264   ;;  %p268_p6 = scmp.lt.s32.totalorder %s795_s25, 1 }
  0x27   : > { %v277_v2 = vld [vmem:[%s846_s14 + $0x20] sm:$0xff]  ;;  %v281_v3 = vunpack.c.l.bf16 %v273_v0  ;;  %v282_v4 = vunpack.c.h.bf16 %v273_v0  ;;  %v285_v5 = vunpack.c.l.bf16 %v275_v1  ;;  %v286_v6 = vunpack.c.h.bf16 %v275_v1  ;;  %v274_v9 = vld [vmem:[%s846_s14 + $0x8] sm:$0xff]  ;;  %v276_v10 = vld [vmem:[%s846_s14 + $0x18] sm:$0xff] }
  0x28   : > { %v289_v7 = vunpack.c.l.bf16 %v277_v2  ;;  %v290_v8 = vunpack.c.h.bf16 %v277_v2  ;;  %v278_v13 = vld [vmem:[%s846_s14 + $0x28] sm:$0xff]  ;;  %v283_v15 = vunpack.c.l.bf16 %v274_v9  ;;  %v284_v16 = vunpack.c.h.bf16 %v274_v9  ;;  %v279_v24 = vld [vmem:[%s846_s14 + $0x30] sm:$0xff]  ;;  %v280_v25 = vld [vmem:[%s846_s14 + $0x38] sm:$0xff]  ;;  %s963_s25 = smov (!%p268_p6, %s795_s25), 1 }
  0x29   : > { %v297_v11 = vadd.f32 %v282_v4, %v281_v3  ;;  %v303_v12 = vadd.f32 %v286_v6, %v285_v5  ;;  %v287_v17 = vunpack.c.l.bf16 %v276_v10  ;;  %v288_v18 = vunpack.c.h.bf16 %v276_v10  ;;  %v373_v34 = vld [vmem:[%s951_s3 + $0x18] sm:$0xff]  ;;  %v372_v35 = vld [vmem:[%s951_s3 + $0x10] sm:$0xff]  ;;  %v371_v37 = vld [vmem:[%s951_s3 + $0x8] sm:$0xff]  ;;  %s581_s30 = sshll.u32 %s963_s25, 1 }
  0x2a   : > { %v309_v14 = vadd.f32 %v290_v8, %v289_v7  ;;  %v291_v19 = vunpack.c.l.bf16 %v278_v13  ;;  %v292_v20 = vunpack.c.h.bf16 %v278_v13  ;;  %v300_v21 = vadd.f32 %v284_v16, %v283_v15  ;;  %390 = vmatpush.msra.mxu0 %v373_v34  ;;  %v370_v38 = vld [vmem:[%s951_s3] sm:$0xff]  ;;  %v331_v42 = vld [vmem:[%s949_s1 + $0x10] sm:$0xff]  ;;  %v330_v43 = vld [vmem:[%s949_s1 + $0x8] sm:$0xff]  ;;  %s271_s10 = scalar_lea.vmem %s954_s6, %s581_s30 }
  0x2b   : > { %298 = vadd.xlane.f32.xlu0 %v297_v11  ;;  %304 = vadd.xlane.f32.xlu1 %v303_v12  ;;  %v306_v22 = vadd.f32 %v288_v18, %v287_v17  ;;  %v293_v26 = vunpack.c.l.bf16 %v279_v24  ;;  %v294_v27 = vunpack.c.h.bf16 %v279_v24  ;;  %v295_v28 = vunpack.c.l.bf16 %v280_v25  ;;  %v329_v40 = vld [vmem:[%s949_s1] sm:$0xff]  ;;  %v332_v45 = vld [vmem:[%s949_s1 + $0x18] sm:$0xff]  ;;  %v334_v57 = vld [vmem:[%s949_s1 + $0x28] sm:$0xff] }
  0x2c   : > { %310 = vadd.xlane.f32.xlu2 %v309_v14  ;;  %v312_v23 = vadd.f32 %v292_v20, %v291_v19  ;;  %v296_v29 = vunpack.c.h.bf16 %v280_v25  ;;  %391 = vmatpush.msra.mxu0 %v372_v35  ;;  %v333_v56 = vld [vmem:[%s949_s1 + $0x20] sm:$0xff]  ;;  %v335_v2 = vld [vmem:[%s949_s1 + $0x30] sm:$0xff]  ;;  %v336_v4 = vld [vmem:[%s949_s1 + $0x38] sm:$0xff]  ;;  %vm493_vm6 = vcmask 1040384   ;;  %vm499_vm7 = vsmask.f32 256 }
  0x2d   : > { %v315_v30 = vadd.f32 %v294_v27, %v293_v26  ;;  %v367_v24 = vld [vmem:[%s950_s2] sm:$0x1]  ;;  %v625_v35 = vld [vmem:[%s846_s14 + $0x24] sm:$0xf0]  ;;  %vm501_vm8 = vcmask 1041409   ;;  %vm500_vm10 = vmand %vm493_vm6, %vm499_vm7 }
  0x2e   : > { %v318_v31 = vadd.f32 %v296_v29, %v295_v28  ;;  %392 = vmatpush.msra.mxu0 %v371_v37  ;;  %v609_v28 = vld [vmem:[%s846_s14 + $0x30] sm:$0xf]  ;;  %v627_v29 = vld [vmem:[%s846_s14 + $0x34] sm:$0xf0]  ;;  %v601_v34 = vld [vmem:[%s846_s14 + $0x20] sm:$0xf] }
  0x2f   : > { %v602_v37 = vor.u32 %v625_v35, %v601_v34  ;;  %vm502_vm9 = vsmask.f32 1280 }
  0x30   : > { %393 = vmatpush.msra.mxu0 %v370_v38  ;;  %v603_v38 = vld [vmem:[%s846_s14 + $0x28] sm:$0xf0]  ;;  %vm503_vm11 = vmand %vm501_vm8, %vm502_vm9 }
  0x31   : > { %vm504_vm12 = vmor %vm503_vm11, %vm500_vm10 }
  0x33   : > { %301 = vadd.xlane.f32.xlu0 %v300_v21  ;;  %307 = vadd.xlane.f32.xlu1 %v306_v22 }
  0x34   : > { %313 = vadd.xlane.f32.xlu2 %v312_v23 }
  0x3b   : > { %316 = vadd.xlane.f32.xlu0 %v315_v30  ;;  %319 = vadd.xlane.f32.xlu1 %v318_v31  ;;  %v626_v30 = vld [vmem:[%s846_s14 + $0x34] sm:$0xf]  ;;  %v610_v31 = vor.u32 %v627_v29, %v609_v28 }
  0x3d   : > { %468 = vmatpush.bf16.msra.mxu1 %v610_v31 }
  0x41   : > { %469 = vmatpush.bf16.msra.mxu1 %v602_v37 }
  0x9e   : > { %v299_v32 = vpop.xlane.xlu0 %298  ;;  %v305_v33 = vpop.xlane.xlu1 %304 }
  0x9f   : > { %v311_v36 = vpop.xlane.xlu2 %310  ;;  %v321_v39 = vmul.f32 0.00390625, %v299_v32  ;;  %v323_v41 = vmul.f32 0.00390625, %v305_v33  ;;  %v611_v32 = vld [vmem:[%s846_s14 + $0x38] sm:$0xf0] }
  0xa0   : > { %v325_v51 = vmul.f32 0.00390625, %v311_v36  ;;  %v614_v33 = vor.u32 %v626_v30, %v611_v32  ;;  %v624_v36 = vld [vmem:[%s846_s14 + $0x24] sm:$0xf] }
  0xa1   : > { %v337_v47 = vmul.f32 %v329_v40, %v321_v39  ;;  %v339_v52 = vmul.f32 %v331_v42, %v323_v41  ;;  %v593_v39 = vld [vmem:[%s846_s14 + $0x10] sm:$0xf]  ;;  %v623_v40 = vld [vmem:[%s846_s14 + $0x14] sm:$0xf0]  ;;  %v606_v41 = vor.u32 %v624_v36, %v603_v38  ;;  %v622_v42 = vld [vmem:[%s846_s14 + $0x14] sm:$0xf] }
  0xa2   : > { %v341_v62 = vmul.f32 %v333_v56, %v325_v51  ;;  %481 = vmatpush.bf16.msra.mxu2 %v614_v33 }
  0xa3   : > { %v346_v58 = vsel %vm345_vm0, %v337_v47, 0.0  ;;  %v349_v61 = vsel %vm345_vm0, %v339_v52, 0.0  ;;  %v621_v47 = vld [vmem:[%s846_s14 + $0x4] sm:$0xf0] }
  0xa4   : > { %v353_v9 = vsel %vm345_vm0, %v341_v62, 0.0 }
  0xa6   : > { %v302_v44 = vpop.xlane.xlu0 %301  ;;  %v308_v46 = vpop.xlane.xlu1 %307  ;;  %482 = vmatpush.bf16.msra.mxu2 %v606_v41 }
  0xa7   : > { %v322_v48 = vmul.f32 0.00390625, %v302_v44  ;;  %v324_v49 = vmul.f32 0.00390625, %v308_v46  ;;  %v314_v50 = vpop.xlane.xlu2 %313  ;;  %v594_v44 = vor.u32 %v623_v40, %v593_v39  ;;  %v585_v46 = vld [vmem:[%s846_s14] sm:$0xf] }
  0xa8   : > { %v326_v55 = vmul.f32 0.00390625, %v314_v50  ;;  %v374_v50 = vld [vmem:[%s952_s4] sm:$0x1]  ;;  %v586_v51 = vor.u32 %v621_v47, %v585_v46 }
  0xa9   : > { %v338_v53 = vmul.f32 %v330_v43, %v322_v48  ;;  %v340_v54 = vmul.f32 %v332_v45, %v324_v49  ;;  %v595_v43 = vld [vmem:[%s846_s14 + $0x18] sm:$0xf0]  ;;  %v620_v48 = vld [vmem:[%s846_s14 + $0x4] sm:$0xf]  ;;  %v587_v49 = vld [vmem:[%s846_s14 + $0x8] sm:$0xf0]  ;;  %470 = vmatpush.bf16.msra.mxu1 %v594_v44 }
  0xaa   : > { %v342_v0 = vmul.f32 %v334_v57, %v326_v55  ;;  %v598_v45 = vor.u32 %v622_v42, %v595_v43  ;;  %v590_v52 = vor.u32 %v620_v48, %v587_v49 }
  0xab   : > { %v347_v59 = vsel %vm345_vm0, %v338_v53, 0.0  ;;  %v351_v63 = vsel %vm345_vm0, %v340_v54, 0.0 }
  0xac   : > { %v348_v60 = vadd.f32 %v347_v59, %v346_v58  ;;  %v355_v10 = vsel %vm345_vm0, %v342_v0, 0.0  ;;  %483 = vmatpush.bf16.msra.mxu2 %v598_v45 }
  0xad   : > { %471 = vmatpush.bf16.msra.mxu1 %v586_v51 }
  0xae   : > { %v350_v1 = vadd.f32 %v349_v61, %v348_v60  ;;  %v317_v3 = vpop.xlane.xlu0 %316  ;;  %v320_v5 = vpop.xlane.xlu1 %319 }
  0xaf   : > { %v327_v6 = vmul.f32 0.00390625, %v317_v3  ;;  %v328_v7 = vmul.f32 0.00390625, %v320_v5  ;;  %v417_v3 = vld [vmem:[%s953_s5] sm:$0x1] }
  0xb0   : > { %v352_v8 = vadd.f32 %v351_v63, %v350_v1  ;;  %484 = vmatpush.bf16.msra.mxu2 %v590_v52 }
  0xb1   : > { %v343_v11 = vmul.f32 %v335_v2, %v327_v6  ;;  %v344_v12 = vmul.f32 %v336_v4, %v328_v7 }
  0xb2   : > { %v354_v13 = vadd.f32 %v353_v9, %v352_v8 }
  0xb3   : > { %v357_v14 = vsel %vm345_vm0, %v343_v11, 0.0  ;;  %v359_v16 = vsel %vm345_vm0, %v344_v12, 0.0 }
  0xb4   : > { %v356_v15 = vadd.f32 %v355_v10, %v354_v13  ;;  %v505_v13 = vld [vmem:[%s271_s10] sm:$0x3] }
  0xb6   : > { %v358_v17 = vadd.f32 %v357_v14, %v356_v15 }
  0xb8   : > { %v360_v18 = vadd.f32 %v359_v16, %v358_v17 }
  0xba   : > { %v361_v19 = vrot.slane %v360_v18, 4 }
  0xbc   : > { %v362_v20 = vadd.f32 %v361_v19, %v360_v18 }
  0xbe   : > { %v363_v21 = vrot.slane %v362_v20, 2 }
  0xc0   : > { %v364_v22 = vadd.f32 %v363_v21, %v362_v20 }
  0xc2   : > { %v365_v23 = vrot.slane %v364_v22, 1 }
  0xc4   : > { %v366_v25 = vadd.f32 %v365_v23, %v364_v22 }
  0xc6   : > { %v368_v26 = vadd.f32 %v367_v24, %v366_v25 }
  0xc8   : > { %v369_v27 = vmax.f32 %v368_v26, 0.0 }
  0xca   : > { %582 = vmatmul.msk.f32.vlgmr.msra.gmra.mxu0 %vm345_vm0, %v369_v27 }
 0x147   : > { %v395_v53 = vpop.f32.mrf.mxu0 }
 0x148   : > { %v396_v54 = vadd.f32 %v395_v53, %v374_v50 }
 0x14a   : > { %v398_v55 = vsub.f32 0.0, %v396_v54 }
 0x14c   : > { %v399_v56 = vmul.f32 1.442695, %v398_v55 }
 0x14e   : > { %669 = vpow2.f32 %v399_v56 }
 0x154   : > { %v670_v57 = vpop.eup %669 }
 0x155   : > { %v401_v58 = vadd.f32 1.0, %v670_v57 }
 0x157   : > { %671 = vrcp.f32 %v401_v58  ;;  %v413_v62 = vand.u32 2147483648, %v401_v58  ;;  %v411_v0 = vand.u32 2147483647, %v401_v58  ;;  %vm407_vm2 = vweird.f32 %v401_v58 }
 0x159   : > { %v414_v2 = vor.u32 1.1754944e-38, %v413_v62  ;;  %vm412_vm4 = vcmp.eq.f32.partialorder %v411_v0, 8.507059e+37 }
 0x15d   : > { %v672_v59 = vpop.eup %671 }
 0x15e   : > { %v403_v60 = vmul.f32 %v672_v59, %v401_v58  ;;  %vm408_vm1 = vweird.f32 %v672_v59 }
 0x15f   : > { %vm409_vm3 = vmor %vm407_vm2, %vm408_vm1 }
 0x160   : > { %v404_v61 = vsub.f32 1.0, %v403_v60 }
 0x162   : > { %v405_v63 = vmul.f32 %v672_v59, %v404_v61 }
 0x164   : > { %v406_v1 = vadd.f32 %v672_v59, %v405_v63 }
 0x166   : > { %v410_v4 = vsel %vm409_vm3, %v672_v59, %v406_v1 }
 0x167   : > { %v415_v5 = vsel %vm412_vm4, %v414_v2, %v410_v4 }
 0x168   : > { %v418_v6 = vmul.f32 %v417_v3, %v415_v5 }
 0x16a   : > { %v419_v7 = vpack.c.bf16 %v418_v6, %v418_v6 }
 0x16c   : > { %615 = vmatmul.msk.bf16.vlgmr.msra.gmra.mxu1 %vm460_vm5, %v419_v7  ;;  %616 = vmatmul.msk.bf16.vlgmr.msra.gmra.mxu2 %vm460_vm5, %v419_v7 }
 0x1e9   : > { %v473_v8 = vpop.f32.mrf.mxu1 }
 0x1ef   : > { %v486_v9 = vpop.f32.mrf.mxu2 }
 0x1f0   : > { %v490_v10 = vpack.c.bf16 %v486_v9, %v473_v8 }
 0x1f1   : > { %v475_v11 = vpop.f32.mrf.mxu1 }
 0x1f2   : > { %v492_v12 = vrot.slane %v490_v10, 3 }
 0x1f4   : > { %v496_v14 = vsel %vm493_vm6, %v490_v10, %v492_v12 }
 0x1f5   : > { %v506_v15 = vsel %vm504_vm12, %v496_v14, %v505_v13 }
 0x1f6   : > { %507 = vst [vmem:[%s271_s10] sm:$0x3] %v506_v15 }
 0x1f7   : > { %v488_v16 = vpop.f32.mrf.mxu2 }
 0x1f8 PF: > { %p16_p7 = scmp.ge.s32.totalorder %s798_s26, 4   ;;  %s958_s21 = smov %s729_s22 }
 0x1f9   : > { %s959_s22 = smov %s733_s23  ;;  %s960_s23 = smov %s808_s29 }
 0x1fa   : > { %s961_s24 = smov %s798_s26  ;;  %18 = sbr.rel (!%p16_p7) target bundleno = 3 (0x3), region = 84 }
 0x1ff   :  { %527 = vsyncpa [#allocation3], 1 }
 0x200   :  { %529 = vsyncpa [#allocation3 + $0x1], 1 }

</bundles_post_ra>
